<compile_context>
chip_gen: v6e
topology: v6e:2x2x1
jax: 0.10.0
libtpu: 0.0.40
codegen_flags: <defaults>
</compile_context>

<pallas_src>
import functools

import jax
import jax.numpy as jnp
import numpy as np
from jax.experimental import pallas as pl
from jax.experimental.pallas import tpu as pltpu

_LANES = 128
_SMALL_SLAB_BYTES = 8 << 20  # single whole-array block at or below this


def _identity_kernel(x_ref, o_ref):
    # Pure pass-through of the current VMEM tile.
    o_ref[...] = x_ref[...]


def _target_tile_bytes() -> int:
    """Per-generation tile-size target for the large-input copy path."""
    try:
        vmem_cap = int(pltpu.get_tpu_info().vmem_capacity_bytes)
    except Exception:  # interpret mode / unknown backend
        vmem_cap = 128 << 20
    if vmem_cap <= (64 << 20):
        # v7x: only 64 MiB VMEM but ~3.2 TB/s HBM -> bigger tiles to amortize
        # the ~0.35 us per-grid-step overhead.
        return 8 << 20
    # v5e / v6e (128 MiB VMEM, 0.8-1.4 TB/s HBM).
    return 4 << 20


def _identity_2d(x2d: jax.Array) -> jax.Array:
    """Lane-dense identity copy of a (rows, 128) slab through Pallas."""
    rows, cols = x2d.shape
    itemsize = jnp.dtype(x2d.dtype).itemsize
    slab_bytes = rows * cols * itemsize

    # Small inputs: one whole-array block, one DMA in / one DMA out, no grid.
    if slab_bytes <= _SMALL_SLAB_BYTES:
        return pl.pallas_call(
            _identity_kernel,
            out_shape=jax.ShapeDtypeStruct(x2d.shape, x2d.dtype),
            input_output_aliases={0: 0},
            compiler_params=pltpu.CompilerParams(
                vmem_limit_bytes=int(max(24 << 20, 4 * slab_bytes)),
            ),
        )(x2d)

    # Large inputs: tile the row axis with ~4-8 MiB blocks (generation aware),
    # cdiv grid so non-divisible row counts stay pipelined (edge block padded).
    row_bytes = cols * itemsize
    block_rows = max(8, (_target_tile_bytes() // row_bytes) // 8 * 8)
    block_rows = min(block_rows, max(8, (rows // 8) * 8))
    tile_bytes = block_rows * row_bytes
    # in+out double-buffered = 4 live tiles; ~25% headroom; cap well under
    # v7x's 64 MiB physical VMEM.
    vmem_limit = int(min(48 << 20, max(24 << 20, 5 * tile_bytes)))

    return pl.pallas_call(
        _identity_kernel,
        out_shape=jax.ShapeDtypeStruct(x2d.shape, x2d.dtype),
        grid=(pl.cdiv(rows, block_rows),),
        in_specs=[pl.BlockSpec((block_rows, cols), lambda i: (i, 0))],
        out_specs=pl.BlockSpec((block_rows, cols), lambda i: (i, 0)),
        input_output_aliases={0: 0},
        compiler_params=pltpu.CompilerParams(
            dimension_semantics=("parallel",),
            vmem_limit_bytes=vmem_limit,
        ),
    )(x2d)


@functools.partial(jax.jit, donate_argnums=(0,))
def _forward_jit(x: jax.Array) -> jax.Array:
    orig_shape = x.shape
    numel = x.size
    if numel == 0:
        return x

    if numel % _LANES == 0:
        # Lane-dense 2-D slab: last dim = 128 lanes -> unmasked full-vreg
        # vld/vst on every tile.
        x2d = x.reshape(numel // _LANES, _LANES)
        return _identity_2d(x2d).reshape(orig_shape)

    # TODO(synk): non-128-divisible element counts are padded to a lane-dense
    # layout, copied, then sliced back; pad/slice costs extra HBM traffic but
    # avoids masked partial-lane stores and ragged DMA.
    padded = pl.cdiv(numel, _LANES) * _LANES
    flat = jnp.pad(x.reshape(-1), (0, padded - numel))
    out2d = _identity_2d(flat.reshape(padded // _LANES, _LANES))
    return out2d.reshape(-1)[:numel].reshape(orig_shape)


def ship_detection_forward(x: jax.Array) -> jax.Array:
    """Pallas equivalent of ShipDetectionModel.forward (an empty forward).

    Routes the input through a lane-dense identity Pallas kernel and returns
    it unchanged.  The input buffer is donated and aliased into the output, so
    callers must not reuse `x` after this call (the fastest faithful
    implementation of the empty reference forward would be `return x`).
    """
    return _forward_jit(x)


if __name__ == "__main__":
    key = jax.random.PRNGKey(0)
    # Small NCHW input consistent with an image-detection style forward.
    x = jax.random.normal(key, (2, 4, 16, 16), dtype=jnp.float32)
    # Host snapshot taken BEFORE the call: the input buffer is donated and
    # aliased to the kernel output, so verify against the snapshot.
    x_ref = np.asarray(jax.device_get(x))

    y = ship_detection_forward(x)
    jax.block_until_ready(y)

    assert y.shape == x_ref.shape and y.dtype == x_ref.dtype
    assert np.array_equal(np.asarray(jax.device_get(y)), x_ref)

    print("KERNEL_OK")
</pallas_src>

<mosaic_0001>
module attributes {stable_mosaic.version = 11 : i64} {
  func.func @_identity_kernel(%arg0: memref<16x128xf32, #tpu.memory_space<vmem>>, %arg1: memref<16x128xf32, #tpu.memory_space<vmem>>) attributes {dimension_semantics = [], scalar_prefetch = 0 : i64, scratch_operands = 0 : i64, tpu.core_type = #tpu.core_type<tc>} {
    %c0 = arith.constant 0 : index
    %c0_0 = arith.constant 0 : index
    %0 = vector.load %arg0[%c0, %c0_0] : memref<16x128xf32, #tpu.memory_space<vmem>>, vector<16x128xf32>
    %c0_1 = arith.constant 0 : index
    %c0_2 = arith.constant 0 : index
    %1 = vector.load %arg1[%c0_1, %c0_2] : memref<16x128xf32, #tpu.memory_space<vmem>>, vector<16x128xf32>
    tpu.vector_store %arg1[%c0_1, %c0_2], %0 {strides = array<i32>} : memref<16x128xf32, #tpu.memory_space<vmem>>, vector<16x128xf32>,
    return
  }
}

</mosaic_0001>

<bundles_post_ra>
// kernel: _forward_jit.1
= control target key start
LH: loop header
LB: loop body
LE: loop exit
PB: predicated region body
PF: predicated region fallthrough
CT: control target
= control target key end

     0   :  { %s38_s0 = inlined_call_operand.vmem [shape: f32[16,128], index: 0, kind: input, shape index: {}, may-alias: {0,1}]   ;;  %s39_s1 = inlined_call_operand.vmem [shape: f32[16,128], index: 1, kind: output, shape index: {}, may-alias: {0,1}]  }
   0x1   :  { %v8_v0 = vld [vmem:[%s38_s0] sm:$0xff]  ;;  %v9_v1 = vld [vmem:[%s38_s0 + $0x8] sm:$0xff] }
   0x2   :  { %10 = vst [vmem:[%s39_s1] sm:$0xff] %v8_v0  ;;  %11 = vst [vmem:[%s39_s1 + $0x8] sm:$0xff] %v9_v1 }

</bundles_post_ra>
